<compile_context>
chip_gen: v7x
topology: tpu7x:2x2x1
jax: 0.10.0
libtpu: 0.0.40
codegen_flags: <defaults>
</compile_context>

<pallas_src>
import functools
import math

import jax
import jax.numpy as jnp
from jax.experimental import pallas as pl
from jax.experimental.pallas import tpu as pltpu


_DMA_RING = 8  # number of in-flight row-gather DMAs per token block


def _round_up(x, m):
    return (x + m - 1) // m * m


def _embedding_block_kernel(
    ids_ref,      # (B * S_pad,) int32, SMEM (scalar prefetch)
    table_hbm,    # (V, D) f32, raw HBM ref (memory_space=pl.ANY)
    pe_ref,       # (TQ, D) f32, VMEM (auto-pipelined blocked input)
    out_ref,      # (TQ, D) f32, VMEM (batch dim squeezed away)
    rows_ref,     # (TQ, D) f32, VMEM scratch: gathered embedding rows
    dma_sems,     # (_DMA_RING,) DMA semaphores
    *,
    scale,
    seq_pad,
    block_q,
):
    b = pl.program_id(0)
    sblk = pl.program_id(1)
    base = b * seq_pad + sblk * block_q  # flat index of first token of this block

    def issue(r):
        tok = ids_ref[base + r]
        pltpu.make_async_copy(
            table_hbm.at[tok], rows_ref.at[r], dma_sems.at[r % _DMA_RING]
        ).start()

    def wait(r):
        # Shape/byte-count of the wait descriptor matches the issued copy; the
        # source index is irrelevant for .wait().
        pltpu.make_async_copy(
            table_hbm.at[0], rows_ref.at[r], dma_sems.at[r % _DMA_RING]
        ).wait()

    # Prime the DMA ring (static unroll, <= _DMA_RING descriptors).
    prime = min(_DMA_RING, block_q)
    for r in range(prime):
        issue(r)

    # Steady state: retire the oldest copy, launch the next one.
    if block_q > _DMA_RING:
        @pl.loop(0, block_q - _DMA_RING)
        def _(i):
            wait(i)
            issue(i + _DMA_RING)

    # Drain the ring.
    @pl.loop(block_q - prime, block_q)
    def _(i):
        wait(i)

    # One vectorized scale+add and one dense (TQ, D) store.
    out_ref[...] = (rows_ref[...] * scale + pe_ref[...]).astype(out_ref.dtype)


def make_positional_encoding(max_len, d_model):
    """Standard sinusoidal PE: pe[p, 2i] = sin(p / 10000^(2i/d)), pe[p, 2i+1] = cos(...)."""
    pos = jnp.arange(max_len, dtype=jnp.float32)[:, None]  # (L, 1)
    i = jnp.arange(0, d_model, 2, dtype=jnp.float32)       # (D/2,)
    div = jnp.exp(-(math.log(10000.0) / d_model) * i)      # (D/2,)
    pe = jnp.zeros((max_len, d_model), jnp.float32)
    pe = pe.at[:, 0::2].set(jnp.sin(pos * div))
    pe = pe.at[:, 1::2].set(jnp.cos(pos * div))
    return pe


def transformer_embedding(ids, table, pe, d_model, *, block_q=256):
    """ids: (B, S) int; table: (V, D) f32; pe: (max_len, D) f32 -> (B, S, D) f32."""
    B, S = ids.shape
    V, D = table.shape

    # Sublane-dense token block (multiple of 8, capped at block_q) and padded S.
    tq = _round_up(min(block_q, _round_up(S, 8)), 8)
    s_pad = _round_up(S, tq)

    # Clamp ids (PyTorch nn.Embedding raises on OOB; clamping keeps the
    # data-dependent HBM row gather in bounds) and pad to the block grid.
    ids_c = jnp.clip(ids.astype(jnp.int32), 0, V - 1)
    if s_pad > S:
        ids_c = jnp.pad(ids_c, ((0, 0), (0, s_pad - S)))
    ids_flat = ids_c.reshape(B * s_pad)

    pe_s = pe[:S].astype(jnp.float32)
    if s_pad > S:
        pe_s = jnp.pad(pe_s, ((0, s_pad - S), (0, 0)))

    kernel = functools.partial(
        _embedding_block_kernel,
        scale=math.sqrt(float(d_model)),
        seq_pad=s_pad,
        block_q=tq,
    )

    n_tok = B * S
    cost = pl.CostEstimate(
        flops=2 * n_tok * D,                       # scale + add per element
        transcendentals=0,
        bytes_accessed=3 * n_tok * D * 4 + n_tok * 4,
    )

    out = pl.pallas_call(
        kernel,
        out_shape=jax.ShapeDtypeStruct((B, s_pad, D), jnp.float32),
        grid_spec=pltpu.PrefetchScalarGridSpec(
            num_scalar_prefetch=1,                 # ids -> SMEM
            grid=(B, s_pad // tq),
            in_specs=[
                # Embedding table stays in HBM; rows gathered by manual DMA.
                pl.BlockSpec(memory_space=pl.ANY),
                # Positional encoding streams in as dense (TQ, D) blocks.
                pl.BlockSpec((tq, D), lambda b, s, ids: (s, 0)),
            ],
            out_specs=pl.BlockSpec(
                (pl.Squeezed(), tq, D), lambda b, s, ids: (b, s, 0)
            ),
            scratch_shapes=[
                pltpu.VMEM((tq, D), jnp.float32),       # gathered rows
                pltpu.SemaphoreType.DMA((_DMA_RING,)),  # DMA ring semaphores
            ],
        ),
        compiler_params=pltpu.CompilerParams(
            # Both grid axes are independent -> megacore sharding on v7x.
            dimension_semantics=("parallel", "parallel"),
        ),
        cost_estimate=cost,
    )(ids_flat, table.astype(jnp.float32), pe_s)

    return out[:, :S, :]


if __name__ == "__main__":
    # Small shapes consistent with the module's forward.
    d_model = 32
    vocab_size = 64
    max_len = 16
    dropout_prob = 0.1  # dropout is identity in eval mode
    # TODO(synk): training-mode dropout (pltpu.stateful_bernoulli) not wired in;
    # forward here matches module.eval() semantics.

    B, S = 2, 8

    key = jax.random.PRNGKey(0)
    k_tab, k_ids = jax.random.split(key)

    # Deterministic parameter init (nn.Embedding default: N(0, 1)).
    table = jax.random.normal(k_tab, (vocab_size, d_model), dtype=jnp.float32)
    pe = make_positional_encoding(max_len, d_model)

    ids = jax.random.randint(k_ids, (B, S), 0, vocab_size, dtype=jnp.int32)

    out = transformer_embedding(ids, table, pe, d_model)
    out = jax.block_until_ready(out)

    # Cross-check against a plain-JAX reference of the same forward pass.
    ref = table[ids] * math.sqrt(float(d_model)) + pe[None, :S, :]
    assert out.shape == (B, S, d_model)
    assert jnp.allclose(out, ref, atol=1e-5, rtol=1e-5)

    print("KERNEL_OK")
</pallas_src>

<mosaic_0001>
module attributes {stable_mosaic.version = 11 : i64} {
  func.func @_embedding_block_kernel(%arg0: i32, %arg1: i32, %arg2: memref<16xi32, #tpu.memory_space<smem>>, %arg3: memref<64x32xf32, #tpu.memory_space<any>>, %arg4: memref<8x32xf32, #tpu.memory_space<vmem>>, %arg5: memref<1x8x32xf32, #tpu.memory_space<vmem>>, %arg6: memref<8x32xf32, #tpu.memory_space<vmem>>, %arg7: memref<8x!tpu.dma_semaphore, #tpu.memory_space<semaphore_mem>>) attributes {dimension_semantics = [#tpu.dimension_semantics<parallel>, #tpu.dimension_semantics<parallel>], iteration_bounds = array<i64: 2, 1>, scalar_prefetch = 1 : i64, scratch_operands = 2 : i64, tpu.core_type = #tpu.core_type<tc>, window_params = [{}, {transform_indices = @transform_1, window_bounds = array<i64: 8, 32>}, {transform_indices = @transform_2, window_bounds = array<i64: 1, 8, 32>}]} {
    %c8_i32 = arith.constant 8 : i32
    %0 = arith.muli %arg0, %c8_i32 : i32
    %c8_i32_0 = arith.constant 8 : i32
    %1 = arith.muli %arg1, %c8_i32_0 : i32
    %2 = arith.addi %0, %1 : i32
    %c0_i32 = arith.constant 0 : i32
    %3 = arith.addi %2, %c0_i32 : i32
    %4 = arith.index_cast %3 : i32 to index
    %5 = memref.load %arg2[%4] : memref<16xi32, #tpu.memory_space<smem>>
    %c0_i32_1 = arith.constant 0 : i32
    %c0_i32_2 = arith.constant 0 : i32
    %c0_i32_3 = arith.constant 0 : i32
    %6 = tpu.memref_slice %arg3[%5, %c0_i32_3] : memref<64x32xf32, #tpu.memory_space<any>> -> memref<1x32xf32, #tpu.memory_space<any>>
    %7 = tpu.memref_squeeze %6 : memref<1x32xf32, #tpu.memory_space<any>> -> memref<32xf32, #tpu.memory_space<any>>
    %c0_i32_4 = arith.constant 0 : i32
    %8 = tpu.memref_slice %arg6[%c0_i32_1, %c0_i32_4] : memref<8x32xf32, #tpu.memory_space<vmem>> -> memref<1x32xf32, #tpu.memory_space<vmem>>
    %9 = tpu.memref_squeeze %8 : memref<1x32xf32, #tpu.memory_space<vmem>> -> memref<32xf32, #tpu.memory_space<vmem>>
    %10 = tpu.memref_slice %arg7[%c0_i32_2] : memref<8x!tpu.dma_semaphore, #tpu.memory_space<semaphore_mem>> -> memref<1x!tpu.dma_semaphore, #tpu.memory_space<semaphore_mem>>
    %11 = tpu.memref_squeeze %10 : memref<1x!tpu.dma_semaphore, #tpu.memory_space<semaphore_mem>> -> memref<!tpu.dma_semaphore, #tpu.memory_space<semaphore_mem>>
    tpu.enqueue_dma source(%7 : memref<32xf32, #tpu.memory_space<any>>) target(%9 : memref<32xf32, #tpu.memory_space<vmem>>) target_semaphore(%11 : memref<!tpu.dma_semaphore, #tpu.memory_space<semaphore_mem>>)
    %c1_i32 = arith.constant 1 : i32
    %12 = arith.addi %2, %c1_i32 : i32
    %13 = arith.index_cast %12 : i32 to index
    %14 = memref.load %arg2[%13] : memref<16xi32, #tpu.memory_space<smem>>
    %c1_i32_5 = arith.constant 1 : i32
    %c1_i32_6 = arith.constant 1 : i32
    %c0_i32_7 = arith.constant 0 : i32
    %15 = tpu.memref_slice %arg3[%14, %c0_i32_7] : memref<64x32xf32, #tpu.memory_space<any>> -> memref<1x32xf32, #tpu.memory_space<any>>
    %16 = tpu.memref_squeeze %15 : memref<1x32xf32, #tpu.memory_space<any>> -> memref<32xf32, #tpu.memory_space<any>>
    %c0_i32_8 = arith.constant 0 : i32
    %17 = tpu.memref_slice %arg6[%c1_i32_5, %c0_i32_8] : memref<8x32xf32, #tpu.memory_space<vmem>> -> memref<1x32xf32, #tpu.memory_space<vmem>>
    %18 = tpu.memref_squeeze %17 : memref<1x32xf32, #tpu.memory_space<vmem>> -> memref<32xf32, #tpu.memory_space<vmem>>
    %19 = tpu.memref_slice %arg7[%c1_i32_6] : memref<8x!tpu.dma_semaphore, #tpu.memory_space<semaphore_mem>> -> memref<1x!tpu.dma_semaphore, #tpu.memory_space<semaphore_mem>>
    %20 = tpu.memref_squeeze %19 : memref<1x!tpu.dma_semaphore, #tpu.memory_space<semaphore_mem>> -> memref<!tpu.dma_semaphore, #tpu.memory_space<semaphore_mem>>
    tpu.enqueue_dma source(%16 : memref<32xf32, #tpu.memory_space<any>>) target(%18 : memref<32xf32, #tpu.memory_space<vmem>>) target_semaphore(%20 : memref<!tpu.dma_semaphore, #tpu.memory_space<semaphore_mem>>)
    %c2_i32 = arith.constant 2 : i32
    %21 = arith.addi %2, %c2_i32 : i32
    %22 = arith.index_cast %21 : i32 to index
    %23 = memref.load %arg2[%22] : memref<16xi32, #tpu.memory_space<smem>>
    %c2_i32_9 = arith.constant 2 : i32
    %c2_i32_10 = arith.constant 2 : i32
    %c0_i32_11 = arith.constant 0 : i32
    %24 = tpu.memref_slice %arg3[%23, %c0_i32_11] : memref<64x32xf32, #tpu.memory_space<any>> -> memref<1x32xf32, #tpu.memory_space<any>>
    %25 = tpu.memref_squeeze %24 : memref<1x32xf32, #tpu.memory_space<any>> -> memref<32xf32, #tpu.memory_space<any>>
    %c0_i32_12 = arith.constant 0 : i32
    %26 = tpu.memref_slice %arg6[%c2_i32_9, %c0_i32_12] : memref<8x32xf32, #tpu.memory_space<vmem>> -> memref<1x32xf32, #tpu.memory_space<vmem>>
    %27 = tpu.memref_squeeze %26 : memref<1x32xf32, #tpu.memory_space<vmem>> -> memref<32xf32, #tpu.memory_space<vmem>>
    %28 = tpu.memref_slice %arg7[%c2_i32_10] : memref<8x!tpu.dma_semaphore, #tpu.memory_space<semaphore_mem>> -> memref<1x!tpu.dma_semaphore, #tpu.memory_space<semaphore_mem>>
    %29 = tpu.memref_squeeze %28 : memref<1x!tpu.dma_semaphore, #tpu.memory_space<semaphore_mem>> -> memref<!tpu.dma_semaphore, #tpu.memory_space<semaphore_mem>>
    tpu.enqueue_dma source(%25 : memref<32xf32, #tpu.memory_space<any>>) target(%27 : memref<32xf32, #tpu.memory_space<vmem>>) target_semaphore(%29 : memref<!tpu.dma_semaphore, #tpu.memory_space<semaphore_mem>>)
    %c3_i32 = arith.constant 3 : i32
    %30 = arith.addi %2, %c3_i32 : i32
    %31 = arith.index_cast %30 : i32 to index
    %32 = memref.load %arg2[%31] : memref<16xi32, #tpu.memory_space<smem>>
    %c3_i32_13 = arith.constant 3 : i32
    %c3_i32_14 = arith.constant 3 : i32
    %c0_i32_15 = arith.constant 0 : i32
    %33 = tpu.memref_slice %arg3[%32, %c0_i32_15] : memref<64x32xf32, #tpu.memory_space<any>> -> memref<1x32xf32, #tpu.memory_space<any>>
    %34 = tpu.memref_squeeze %33 : memref<1x32xf32, #tpu.memory_space<any>> -> memref<32xf32, #tpu.memory_space<any>>
    %c0_i32_16 = arith.constant 0 : i32
    %35 = tpu.memref_slice %arg6[%c3_i32_13, %c0_i32_16] : memref<8x32xf32, #tpu.memory_space<vmem>> -> memref<1x32xf32, #tpu.memory_space<vmem>>
    %36 = tpu.memref_squeeze %35 : memref<1x32xf32, #tpu.memory_space<vmem>> -> memref<32xf32, #tpu.memory_space<vmem>>
    %37 = tpu.memref_slice %arg7[%c3_i32_14] : memref<8x!tpu.dma_semaphore, #tpu.memory_space<semaphore_mem>> -> memref<1x!tpu.dma_semaphore, #tpu.memory_space<semaphore_mem>>
    %38 = tpu.memref_squeeze %37 : memref<1x!tpu.dma_semaphore, #tpu.memory_space<semaphore_mem>> -> memref<!tpu.dma_semaphore, #tpu.memory_space<semaphore_mem>>
    tpu.enqueue_dma source(%34 : memref<32xf32, #tpu.memory_space<any>>) target(%36 : memref<32xf32, #tpu.memory_space<vmem>>) target_semaphore(%38 : memref<!tpu.dma_semaphore, #tpu.memory_space<semaphore_mem>>)
    %c4_i32 = arith.constant 4 : i32
    %39 = arith.addi %2, %c4_i32 : i32
    %40 = arith.index_cast %39 : i32 to index
    %41 = memref.load %arg2[%40] : memref<16xi32, #tpu.memory_space<smem>>
    %c4_i32_17 = arith.constant 4 : i32
    %c4_i32_18 = arith.constant 4 : i32
    %c0_i32_19 = arith.constant 0 : i32
    %42 = tpu.memref_slice %arg3[%41, %c0_i32_19] : memref<64x32xf32, #tpu.memory_space<any>> -> memref<1x32xf32, #tpu.memory_space<any>>
    %43 = tpu.memref_squeeze %42 : memref<1x32xf32, #tpu.memory_space<any>> -> memref<32xf32, #tpu.memory_space<any>>
    %c0_i32_20 = arith.constant 0 : i32
    %44 = tpu.memref_slice %arg6[%c4_i32_17, %c0_i32_20] : memref<8x32xf32, #tpu.memory_space<vmem>> -> memref<1x32xf32, #tpu.memory_space<vmem>>
    %45 = tpu.memref_squeeze %44 : memref<1x32xf32, #tpu.memory_space<vmem>> -> memref<32xf32, #tpu.memory_space<vmem>>
    %46 = tpu.memref_slice %arg7[%c4_i32_18] : memref<8x!tpu.dma_semaphore, #tpu.memory_space<semaphore_mem>> -> memref<1x!tpu.dma_semaphore, #tpu.memory_space<semaphore_mem>>
    %47 = tpu.memref_squeeze %46 : memref<1x!tpu.dma_semaphore, #tpu.memory_space<semaphore_mem>> -> memref<!tpu.dma_semaphore, #tpu.memory_space<semaphore_mem>>
    tpu.enqueue_dma source(%43 : memref<32xf32, #tpu.memory_space<any>>) target(%45 : memref<32xf32, #tpu.memory_space<vmem>>) target_semaphore(%47 : memref<!tpu.dma_semaphore, #tpu.memory_space<semaphore_mem>>)
    %c5_i32 = arith.constant 5 : i32
    %48 = arith.addi %2, %c5_i32 : i32
    %49 = arith.index_cast %48 : i32 to index
    %50 = memref.load %arg2[%49] : memref<16xi32, #tpu.memory_space<smem>>
    %c5_i32_21 = arith.constant 5 : i32
    %c5_i32_22 = arith.constant 5 : i32
    %c0_i32_23 = arith.constant 0 : i32
    %51 = tpu.memref_slice %arg3[%50, %c0_i32_23] : memref<64x32xf32, #tpu.memory_space<any>> -> memref<1x32xf32, #tpu.memory_space<any>>
    %52 = tpu.memref_squeeze %51 : memref<1x32xf32, #tpu.memory_space<any>> -> memref<32xf32, #tpu.memory_space<any>>
    %c0_i32_24 = arith.constant 0 : i32
    %53 = tpu.memref_slice %arg6[%c5_i32_21, %c0_i32_24] : memref<8x32xf32, #tpu.memory_space<vmem>> -> memref<1x32xf32, #tpu.memory_space<vmem>>
    %54 = tpu.memref_squeeze %53 : memref<1x32xf32, #tpu.memory_space<vmem>> -> memref<32xf32, #tpu.memory_space<vmem>>
    %55 = tpu.memref_slice %arg7[%c5_i32_22] : memref<8x!tpu.dma_semaphore, #tpu.memory_space<semaphore_mem>> -> memref<1x!tpu.dma_semaphore, #tpu.memory_space<semaphore_mem>>
    %56 = tpu.memref_squeeze %55 : memref<1x!tpu.dma_semaphore, #tpu.memory_space<semaphore_mem>> -> memref<!tpu.dma_semaphore, #tpu.memory_space<semaphore_mem>>
    tpu.enqueue_dma source(%52 : memref<32xf32, #tpu.memory_space<any>>) target(%54 : memref<32xf32, #tpu.memory_space<vmem>>) target_semaphore(%56 : memref<!tpu.dma_semaphore, #tpu.memory_space<semaphore_mem>>)
    %c6_i32 = arith.constant 6 : i32
    %57 = arith.addi %2, %c6_i32 : i32
    %58 = arith.index_cast %57 : i32 to index
    %59 = memref.load %arg2[%58] : memref<16xi32, #tpu.memory_space<smem>>
    %c6_i32_25 = arith.constant 6 : i32
    %c6_i32_26 = arith.constant 6 : i32
    %c0_i32_27 = arith.constant 0 : i32
    %60 = tpu.memref_slice %arg3[%59, %c0_i32_27] : memref<64x32xf32, #tpu.memory_space<any>> -> memref<1x32xf32, #tpu.memory_space<any>>
    %61 = tpu.memref_squeeze %60 : memref<1x32xf32, #tpu.memory_space<any>> -> memref<32xf32, #tpu.memory_space<any>>
    %c0_i32_28 = arith.constant 0 : i32
    %62 = tpu.memref_slice %arg6[%c6_i32_25, %c0_i32_28] : memref<8x32xf32, #tpu.memory_space<vmem>> -> memref<1x32xf32, #tpu.memory_space<vmem>>
    %63 = tpu.memref_squeeze %62 : memref<1x32xf32, #tpu.memory_space<vmem>> -> memref<32xf32, #tpu.memory_space<vmem>>
    %64 = tpu.memref_slice %arg7[%c6_i32_26] : memref<8x!tpu.dma_semaphore, #tpu.memory_space<semaphore_mem>> -> memref<1x!tpu.dma_semaphore, #tpu.memory_space<semaphore_mem>>
    %65 = tpu.memref_squeeze %64 : memref<1x!tpu.dma_semaphore, #tpu.memory_space<semaphore_mem>> -> memref<!tpu.dma_semaphore, #tpu.memory_space<semaphore_mem>>
    tpu.enqueue_dma source(%61 : memref<32xf32, #tpu.memory_space<any>>) target(%63 : memref<32xf32, #tpu.memory_space<vmem>>) target_semaphore(%65 : memref<!tpu.dma_semaphore, #tpu.memory_space<semaphore_mem>>)
    %c7_i32 = arith.constant 7 : i32
    %66 = arith.addi %2, %c7_i32 : i32
    %67 = arith.index_cast %66 : i32 to index
    %68 = memref.load %arg2[%67] : memref<16xi32, #tpu.memory_space<smem>>
    %c7_i32_29 = arith.constant 7 : i32
    %c7_i32_30 = arith.constant 7 : i32
    %c0_i32_31 = arith.constant 0 : i32
    %69 = tpu.memref_slice %arg3[%68, %c0_i32_31] : memref<64x32xf32, #tpu.memory_space<any>> -> memref<1x32xf32, #tpu.memory_space<any>>
    %70 = tpu.memref_squeeze %69 : memref<1x32xf32, #tpu.memory_space<any>> -> memref<32xf32, #tpu.memory_space<any>>
    %c0_i32_32 = arith.constant 0 : i32
    %71 = tpu.memref_slice %arg6[%c7_i32_29, %c0_i32_32] : memref<8x32xf32, #tpu.memory_space<vmem>> -> memref<1x32xf32, #tpu.memory_space<vmem>>
    %72 = tpu.memref_squeeze %71 : memref<1x32xf32, #tpu.memory_space<vmem>> -> memref<32xf32, #tpu.memory_space<vmem>>
    %73 = tpu.memref_slice %arg7[%c7_i32_30] : memref<8x!tpu.dma_semaphore, #tpu.memory_space<semaphore_mem>> -> memref<1x!tpu.dma_semaphore, #tpu.memory_space<semaphore_mem>>
    %74 = tpu.memref_squeeze %73 : memref<1x!tpu.dma_semaphore, #tpu.memory_space<semaphore_mem>> -> memref<!tpu.dma_semaphore, #tpu.memory_space<semaphore_mem>>
    tpu.enqueue_dma source(%70 : memref<32xf32, #tpu.memory_space<any>>) target(%72 : memref<32xf32, #tpu.memory_space<vmem>>) target_semaphore(%74 : memref<!tpu.dma_semaphore, #tpu.memory_space<semaphore_mem>>)
    %c0_i32_33 = arith.constant 0 : i32
    %c8_i32_34 = arith.constant 8 : i32
    %75 = arith.addi %c0_i32_33, %c8_i32_34 : i32
    %c1_i32_35 = arith.constant 1 : i32
    scf.for %arg8 = %c0_i32_33 to %75 step %c1_i32_35  : i32 {
      %c1_i32_43 = arith.constant 1 : i32
      %84 = arith.muli %arg8, %c1_i32_43 : i32
      %c0_i32_44 = arith.constant 0 : i32
      %85 = arith.addi %c0_i32_44, %84 : i32
      %c8_i32_45 = arith.constant 8 : i32
      %c0_i32_46 = arith.constant 0 : i32
      %86 = arith.cmpi eq, %c8_i32_45, %c0_i32_46 : i32
      %c1_i32_47 = arith.constant 1 : i32
      %87 = arith.select %86, %c1_i32_47, %c8_i32_45 : i32
      %88 = arith.remsi %85, %87 : i32
      %c0_i32_48 = arith.constant 0 : i32
      %89 = arith.cmpi ne, %88, %c0_i32_48 : i32
      %c0_i32_49 = arith.constant 0 : i32
      %90 = arith.cmpi slt, %88, %c0_i32_49 : i32
      %c0_i32_50 = arith.constant 0 : i32
      %91 = arith.cmpi slt, %87, %c0_i32_50 : i32
      %92 = arith.xori %90, %91 : i1
      %93 = arith.andi %92, %89 : i1
      %94 = arith.addi %88, %87 : i32
      %95 = arith.select %93, %94, %88 : i32
      %c0_i32_51 = arith.constant 0 : i32
      %c0_i32_52 = arith.constant 0 : i32
      %96 = tpu.memref_slice %arg3[%c0_i32_51, %c0_i32_52] : memref<64x32xf32, #tpu.memory_space<any>> -> memref<1x32xf32, #tpu.memory_space<any>>
      %97 = tpu.memref_squeeze %96 : memref<1x32xf32, #tpu.memory_space<any>> -> memref<32xf32, #tpu.memory_space<any>>
      %c0_i32_53 = arith.constant 0 : i32
      %98 = tpu.memref_slice %arg6[%85, %c0_i32_53] : memref<8x32xf32, #tpu.memory_space<vmem>> -> memref<1x32xf32, #tpu.memory_space<vmem>>
      %99 = tpu.memref_squeeze %98 : memref<1x32xf32, #tpu.memory_space<vmem>> -> memref<32xf32, #tpu.memory_space<vmem>>
      %100 = tpu.memref_slice %arg7[%95] : memref<8x!tpu.dma_semaphore, #tpu.memory_space<semaphore_mem>> -> memref<1x!tpu.dma_semaphore, #tpu.memory_space<semaphore_mem>>
      %101 = tpu.memref_squeeze %100 : memref<1x!tpu.dma_semaphore, #tpu.memory_space<semaphore_mem>> -> memref<!tpu.dma_semaphore, #tpu.memory_space<semaphore_mem>>
      tpu.wait_dma2 semaphore(%101 : memref<!tpu.dma_semaphore, #tpu.memory_space<semaphore_mem>>) src(%97 : memref<32xf32, #tpu.memory_space<any>>) dst(%99 : memref<32xf32, #tpu.memory_space<vmem>>)
    }
    %c8_i32_36 = arith.constant 8 : i32
    %c0 = arith.constant 0 : index
    %c0_37 = arith.constant 0 : index
    %76 = vector.load %arg6[%c0, %c0_37] : memref<8x32xf32, #tpu.memory_space<vmem>>, vector<8x32xf32>
    %cst = arith.constant 5.65685415 : f32
    %77 = vector.broadcast %cst : f32 to vector<8x32xf32>
    %78 = arith.mulf %76, %77 : vector<8x32xf32>
    %c0_38 = arith.constant 0 : index
    %c0_39 = arith.constant 0 : index
    %79 = vector.load %arg4[%c0_38, %c0_39] : memref<8x32xf32, #tpu.memory_space<vmem>>, vector<8x32xf32>
    %80 = arith.addf %78, %79 : vector<8x32xf32>
    %c0_40 = arith.constant 0 : index
    %c0_41 = arith.constant 0 : index
    %c0_42 = arith.constant 0 : index
    %81 = vector.load %arg5[%c0_40, %c0_41, %c0_42] : memref<1x8x32xf32, #tpu.memory_space<vmem>>, vector<1x8x32xf32>
    %82 = vector.shape_cast %81 : vector<1x8x32xf32> to vector<8x32xf32>
    %83 = vector.shape_cast %80 : vector<8x32xf32> to vector<1x8x32xf32>
    tpu.vector_store %arg5[%c0_40, %c0_41, %c0_42], %83 {strides = array<i32>} : memref<1x8x32xf32, #tpu.memory_space<vmem>>, vector<1x8x32xf32>,
    return
  }
  func.func @transform_1(%arg0: i32, %arg1: i32, %arg2: memref<16xi32, #tpu.memory_space<smem>>) -> (i32, i32) {
    %c0_i32 = arith.constant 0 : i32
    %c0_i32_0 = arith.constant 0 : i32
    return %arg1, %c0_i32 : i32, i32
  }
  func.func @transform_2(%arg0: i32, %arg1: i32, %arg2: memref<16xi32, #tpu.memory_space<smem>>) -> (i32, i32, i32) {
    %c0_i32 = arith.constant 0 : i32
    %c0_i32_0 = arith.constant 0 : i32
    return %arg0, %arg1, %c0_i32 : i32, i32, i32
  }
}

</mosaic_0001>

<bundles_post_ra>
// kernel: tpu_custom_call.1
= control target key start
LH: loop header
LB: loop body
LE: loop exit
PB: predicated region body
PF: predicated region fallthrough
CT: control target
= control target key end

     0   :  { %s1166_s0 = inlined_call_operand.vmem [shape: s32[16], index: 0, kind: input, shape index: {}]   ;;  %s1167_s1 = inlined_call_operand.vmem [shape: f32[64,32], index: 1, kind: input, shape index: {}]   ;;  %s1168_s2 = inlined_call_operand.vmem [shape: f32[8,32], index: 2, kind: input, shape index: {}]   ;;  %s1169_s3 = inlined_call_operand.hbm [shape: f32[2,8,32], index: 3, kind: output, shape index: {}]  }
   0x1   :  { %s8_s14 = sshll.u32 %s1166_s0, 4  ;;  %s9_s14 = int_to_ptr.vmem [resolvable:$true] %s8_s14 }
   0x2   :  { %s881_s15 = scalar_lea.vmem %s9_s14, 16  ;;  %p886_p1 = scmp.lt.s32.totalorder %s9_s14, %s9_s14 }
   0x3   :  { %p882_p0 = scmp.ne.s32.totalorder %s9_s14, %s881_s15  ;;  %p887_p2 = scmp.lt.s32.totalorder %s881_s15, %s881_s15 }
   0x5   :  { %p888_p3 = por %p887_p2, %p886_p1 }
   0x7   :  { %p889_p4 = pnand %p888_p3, %p882_p0 }
   0x9   :  { %892 = shalt.err (!%p889_p4)  }
   0xa   :  { %s985_s16 = smov [#allocation5]  }
   0xb   :  { %11 = dma.vmem_to_smem %s9_s14, 16, %s985_s16, [#allocation4] }
   0xc   :  { %949 = dma.done.wait [#allocation4], 16 }
   0xd   :  { %950 = vsyncadd [#allocation4], 4294967280 }
   0xe   :  { %13 = sfence }
   0xf   :  { %14 = vsyncpa [#allocation7], 0 }
  0x10   :  { %16 = vsyncpa [#allocation7 + $0x1], 0  ;;  %s1010_s17 = smov 0   ;;  %s1012_s18 = smov 0  }
  0x11   :  { %s1014_s0 = smov 0   ;;  %s1016_s19 = smov 0  }
  0x12   :  { %s1018_s20 = smov 0   ;;  %s1020_s21 = smov 0  }
  0x13 LB: > { %s795_s22 = sadd.s32 4294967295, %s979_s21   ;;  %s796_s23 = sadd.s32 4294967294, %s979_s21   ;;  %s979_s21 = sphi %s1020_s21, %s22_s21   ;;  %s975_s20 = sphi %s1018_s20, %s1176_s20   ;;  %s971_s19 = sphi %s1016_s19, %s1175_s19   ;;  %s967_s0 = sphi %s1014_s0, %s1174_s0   ;;  %s963_s18 = sphi %s1012_s18, %s1173_s18   ;;  %s959_s17 = sphi %s1010_s17, %s1172_s17  }
  0x14   : > { %s34_s24 = sadd.s32 1, %s975_s20  ;;  %s69_s25 = sadd.s32 1, %s967_s0 }
  0x15   : > { %p36_p5 = scmp.ge.s32.totalorder %s34_s24, 2  ;;  %p79_p6 = scmp.ne.s32.totalorder %s967_s0, %s963_s18 }
  0x16   : > { %p80_p7 = scmp.eq.s32.totalorder %s795_s22, 1  ;;  %p85_p8 = scmp.ne.s32.totalorder %s963_s18, %s959_s17 }
  0x17   : > { %s1178_s24 = smov (%p36_p5, %s34_s24), 0  ;;  %p86_p10 = scmp.eq.s32.totalorder %s796_s23, 1 }
  0x18   : > { %p1050_p9 = por %p80_p7, %p79_p6  ;;  %s64_s27 = ssub.s32 %s975_s20, %s1178_s24 }
  0x19   : > { %p799_p11 = scmp.ge.s32.totalorder %s979_s21, 1  ;;  %p67_p12 = scmp.eq.s32.totalorder %s64_s27, 0 }
  0x1a   : > { %p1057_p13 = por %p86_p10, %p85_p8  ;;  %p111_p0 = scmp.lt.s32.totalorder %s979_s21, 3 }
  0x1b   : > { %s1063_s29 = scalar_select %p67_p12, %s967_s0, %s69_s25  }
  0x1c   : > { %p112_p1 = pnand %p799_p11, %p111_p0 }
  0x1d   : > { %s127_s30 = sand.u32 (!%p112_p1), 1, %s963_s18   ;;  %s1067_s4 = sshll.u32 (!%p112_p1), %s971_s19, 3 }
  0x1e   : > { %115 = sbr.rel (%p112_p1) target bundleno = 148 (0x94), region = 24  ;;  %s1071_s5 = sshll.u32 (!%p112_p1), %s127_s30, 3 }
  0x1f   : > { %s137_s6 = sld [smem:[#allocation5 + %s1067_s4]] (!%p112_p1)  ;;  %s129_s10 = scalar_lea.vmem (!%p112_p1), [#allocation6], %s1071_s5 }
  0x25   : > { %s138_s9 = scalar_lea.vmem %s1167_s1, %s137_s6 }
  0x26   : > { %v156_v0 = vld [vmem:[%s138_s9] sm:$0x1] }
  0x27   : > { %157 = vst [vmem:[#allocation2] sm:$0x1] %v156_v0 }
  0x28   : > { %182 = vsyncadd [#allocation3], 16  ;;  %s183_s11 = sadd.s32 1, %s1067_s4 }
  0x29   : > { %s184_s12 = sld [smem:[#allocation5 + %s183_s11]] }
  0x2f   : > { %s185_s15 = scalar_lea.vmem %s1167_s1, %s184_s12 }
  0x30   : > { %v205_v1 = vld [vmem:[%s185_s15] sm:$0x1] }
  0x31   : > { %206 = vst [vmem:[#allocation2 + $0x1] sm:$0x1] %v205_v1 }
  0x32   : > { %231 = vsyncadd [#allocation3 + $0x1], 16  ;;  %s232_s16 = sadd.s32 2, %s1067_s4 }
  0x33   : > { %s233_s22 = sld [smem:[#allocation5 + %s232_s16]] }
  0x39   : > { %s234_s27 = scalar_lea.vmem %s1167_s1, %s233_s22 }
  0x3a   : > { %v254_v2 = vld [vmem:[%s234_s27] sm:$0x1] }
  0x3b   : > { %255 = vst [vmem:[#allocation2 + $0x2] sm:$0x1] %v254_v2 }
  0x3c   : > { %280 = vsyncadd [#allocation3 + $0x2], 16  ;;  %s281_s6 = sadd.s32 3, %s1067_s4 }
  0x3d   : > { %s282_s7 = sld [smem:[#allocation5 + %s281_s6]] }
  0x43   : > { %s283_s11 = scalar_lea.vmem %s1167_s1, %s282_s7 }
  0x44   : > { %v303_v3 = vld [vmem:[%s283_s11] sm:$0x1] }
  0x45   : > { %304 = vst [vmem:[#allocation2 + $0x3] sm:$0x1] %v303_v3 }
  0x46   : > { %329 = vsyncadd [#allocation3 + $0x3], 16  ;;  %s330_s12 = sadd.s32 4, %s1067_s4 }
  0x47   : > { %s331_s13 = sld [smem:[#allocation5 + %s330_s12]] }
  0x4d   : > { %s332_s16 = scalar_lea.vmem %s1167_s1, %s331_s13 }
  0x4e   : > { %v352_v4 = vld [vmem:[%s332_s16] sm:$0x1] }
  0x4f   : > { %353 = vst [vmem:[#allocation2 + $0x4] sm:$0x1] %v352_v4 }
  0x50   : > { %378 = vsyncadd [#allocation3 + $0x4], 16  ;;  %s379_s22 = sadd.s32 5, %s1067_s4 }
  0x51   : > { %s380_s23 = sld [smem:[#allocation5 + %s379_s22]] }
  0x57   : > { %s381_s6 = scalar_lea.vmem %s1167_s1, %s380_s23 }
  0x58   : > { %v401_v5 = vld [vmem:[%s381_s6] sm:$0x1] }
  0x59   : > { %402 = vst [vmem:[#allocation2 + $0x5] sm:$0x1] %v401_v5 }
  0x5a   : > { %427 = vsyncadd [#allocation3 + $0x5], 16  ;;  %s428_s7 = sadd.s32 6, %s1067_s4 }
  0x5b   : > { %s429_s8 = sld [smem:[#allocation5 + %s428_s7]] }
  0x61   : > { %s430_s12 = scalar_lea.vmem %s1167_s1, %s429_s8 }
  0x62   : > { %v450_v6 = vld [vmem:[%s430_s12] sm:$0x1] }
  0x63   : > { %451 = vst [vmem:[#allocation2 + $0x6] sm:$0x1] %v450_v6 }
  0x64   : > { %476 = vsyncadd [#allocation3 + $0x6], 16  ;;  %s477_s13 = sadd.s32 7, %s1067_s4 }
  0x65   : > { %s478_s14 = sld [smem:[#allocation5 + %s477_s13]] }
  0x6b   : > { %s479_s22 = scalar_lea.vmem %s1167_s1, %s478_s14 }
  0x6c   : > { %v499_v7 = vld [vmem:[%s479_s22] sm:$0x1] }
  0x6d   : > { %500 = vst [vmem:[#allocation2 + $0x7] sm:$0x1] %v499_v7 }
  0x6e   : > { %525 = vsyncadd [#allocation3 + $0x7], 16  ;;  %s981_s23 = smov 0  }
  0x6f LB: >> { %p532_p2 = scmp.lt.s32.totalorder %s983_s23, 0  ;;  %s533_s25 = ssub.s32 0, %s983_s23  ;;  %s983_s23 = sphi %s981_s23, %s531_s23  }
  0x70   : >> { %s802_s27 = smin.u32 %s983_s23, %s533_s25 }
  0x71   : >> { %s535_s6 = sand.u32 7, %s802_s27  }
  0x72   : >> { %s536_s7 = ssub.s32 0, %s535_s6 }
  0x73   : >> { %s1180_s7 = smov (!%p532_p2, %s536_s7), %s535_s6 }
  0x74   : >> { %p804_p3 = scmp.lt.s32.totalorder %s1180_s7, 0  ;;  %s542_s4 = sadd.s32 8, %s1180_s7 }
  0x76   : >> { %s1182_s4 = smov (!%p804_p3, %s542_s4), %s1180_s7 }
  0x77   : >> { %s544_s8 = scalar_lea.sflag [#allocation3], %s1182_s4 }
  0x78   : >> { %951 = dma.done.wait %s544_s8, 16 }
  0x79   : >> { %952 = vsyncadd %s544_s8, 4294967280  ;;  %s531_s23 = sadd.s32 1, %s983_s23  }
  0x7a   : >> { %p528_p4 = scmp.ge.s32.totalorder %s531_s23, 8  }
  0x7b   : > { %v547_v8 = vld [vmem:[#allocation2] sm:$0xff] (%p528_p4)  ;;  %s806_s12 = sshll.u32 (%p528_p4), %s971_s19, 7  ;;  %s568_s13 = sshll.u32 (%p528_p4), %s129_s10, 4  ;;  %vm551_vm0 = vcmask (%p528_p4), 261120   ;;  %s1117_s13 = int_to_ptr.vmem [resolvable:$true] %s568_s13 }
  0x7c   : > { %530 = sbr.rel (!%p528_p4) target bundleno = 111 (0x6f), region = 416  ;;  %v549_v9 = vld [vmem:[%s1168_s2] sm:$0xff] (%p528_p4)  ;;  %v548_v10 = vmul.f32 (%p528_p4), 5.656854, %v547_v8  ;;  %s1115_s16 = scalar_lea.hbm (%p528_p4), %s1169_s3, %s806_s12 }
  0x7d   : > { %s554_s22 = scalar_lea.sflag (%p528_p4), [#allocation7], %s127_s30  ;;  %s893_s19 = scalar_lea.vmem (%p528_p4), %s1117_s13, 128 }
  0x7e   : > { %v550_v11 = vadd.f32 (%p528_p4), %v549_v9, %v548_v10  ;;  %p894_p5 = scmp.ne.s32.totalorder (%p528_p4), %s1117_s13, %s893_s19  ;;  %s986_s23 = smov (%p528_p4), [#allocation6]  }
  0x7f   : > { %s897_s25 = sshll.u32 (%p528_p4), %s986_s23, 4  ;;  %s898_s25 = int_to_ptr.vmem [resolvable:$false] %s897_s25 }
  0x80   : > { %552 = vst.msk [vmem:[%s129_s10] sm:$0xff] (%p528_p4), %vm551_vm0, %v550_v11  ;;  %p895_p6 = pnand (%p528_p4), %p894_p5, %p1050_p9  ;;  %s899_s27 = scalar_lea.vmem (%p528_p4), %s898_s25, 256 }
  0x81   : > { %p900_p8 = scmp.lt.s32.totalorder (%p528_p4), %s1117_s13, %s898_s25  ;;  %p901_p10 = scmp.lt.s32.totalorder (%p528_p4), %s899_s27, %s893_s19 }
  0x82   : > { %p896_p7 = pneg (%p528_p4), %p895_p6 }
  0x83   : > { %p902_p11 = por %p901_p10, %p900_p8 }
  0x85   : > { %p903_p12 = pnand %p902_p11, %p896_p7 }
  0x87   : > { %906 = shalt.err (!%p903_p12)
}
  0x88   : > { %s907_s30 = scalar_lea.hbm %s1115_s16, 128  ;;  %s911_s6 = scalar_lea.hbm %s1169_s3, 256 }
  0x89   : > { %p908_p0 = scmp.ne.s32.totalorder %s1115_s16, %s907_s30  ;;  %p912_p3 = scmp.lt.u32.totalorder %s1115_s16, %s1169_s3 }
  0x8a   : > { %p913_p4 = scmp.lt.u32.totalorder %s911_s6, %s907_s30  ;;  %p915_p6 = scmp.lt.u32.totalorder %s907_s30, %s1115_s16 }
  0x8b   : > { %p909_p1 = pnand %p908_p0, %p1050_p9 }
  0x8c   : > { %p914_p5 = por %p913_p4, %p912_p3 }
  0x8d   : > { %p910_p2 = pneg %p909_p1 }
  0x8e   : > { %p916_p7 = por %p915_p6, %p914_p5 }
  0x90   : > { %p917_p8 = pnand %p916_p7, %p910_p2 }
  0x92   : > { %920 = shalt.err (!%p917_p8)
}
  0x93   : > { %817 = dma.vmem_to_hbm [thread:$0]  (%p1050_p9), %s1117_s13, 128, %s1115_s16, %s554_s22  }
  0x94 PF: > { %p823_p10 = scmp.ge.s32.totalorder %s979_s21, 2  ;;  %s580_s8 = sand.u32 1, %s959_s17  }
  0x95   : > { %s581_s9 = scalar_lea.sflag [#allocation7], %s580_s8 }
  0x96   : > { %p820_p11 = pnand %p823_p10, %p1057_p13 }
  0x98   : > { %954 = dma.done.wait (!%p820_p11), %s581_s9, 128  }
  0x99   : > { %956 = vsyncadd (!%p820_p11), %s581_s9, 4294967168  ;;  %s22_s21 = sadd.s32 1, %s979_s21   ;;  %s1172_s17 = smov %s963_s18 }
  0x9a   : > { %p19_p12 = scmp.ge.s32.totalorder %s22_s21, 4   ;;  %s1173_s18 = smov %s967_s0 }
  0x9b   : > { %s1174_s0 = smov %s1063_s29  ;;  %s1175_s19 = smov %s975_s20 }
  0x9c   : > { %s1176_s20 = smov %s1178_s24  ;;  %21 = sbr.rel (!%p19_p12) target bundleno = 19 (0x13), region = 427 }
  0xa3   :  { %586 = vsyncpa [#allocation7], 1 }
  0xa4   :  { %588 = vsyncpa [#allocation7 + $0x1], 1 }
  0xa5   :  { %589 = vsyncmov [#allocation3] }
  0xa8   :  { %s590_s26 = vpop.sfrf %589 }
  0xa9   :  { %p809_p9 = scmp.ne.s32.totalorder %s590_s26, 0 }
  0xab   :  { %594 = shalt.err (%p809_p9)  }
  0xac   :  { %596 = vsyncmov [#allocation3 + $0x1] }
  0xaf   :  { %s597_s28 = vpop.sfrf %596 }
  0xb0   :  { %p810_p13 = scmp.ne.s32.totalorder %s597_s28, 0 }
  0xb2   :  { %601 = shalt.err (%p810_p13)  }
  0xb3   :  { %603 = vsyncmov [#allocation3 + $0x2] }
  0xb6   :  { %s604_s11 = vpop.sfrf %603 }
  0xb7   :  { %p811_p0 = scmp.ne.s32.totalorder %s604_s11, 0 }
  0xb9   :  { %608 = shalt.err (%p811_p0)  }
  0xba   :  { %610 = vsyncmov [#allocation3 + $0x3] }
  0xbd   :  { %s611_s29 = vpop.sfrf %610 }
  0xbe   :  { %p812_p1 = scmp.ne.s32.totalorder %s611_s29, 0 }
  0xc0   :  { %615 = shalt.err (%p812_p1)  }
  0xc1   :  { %617 = vsyncmov [#allocation3 + $0x4] }
  0xc4   :  { %s618_s21 = vpop.sfrf %617 }
  0xc5   :  { %p813_p2 = scmp.ne.s32.totalorder %s618_s21, 0 }
  0xc7   :  { %622 = shalt.err (%p813_p2)  }
  0xc8   :  { %624 = vsyncmov [#allocation3 + $0x5] }
  0xcb   :  { %s625_s1 = vpop.sfrf %624 }
  0xcc   :  { %p814_p3 = scmp.ne.s32.totalorder %s625_s1, 0 }
  0xce   :  { %629 = shalt.err (%p814_p3)  }
  0xcf   :  { %631 = vsyncmov [#allocation3 + $0x6] }
  0xd2   :  { %s632_s2 = vpop.sfrf %631 }
  0xd3   :  { %p815_p4 = scmp.ne.s32.totalorder %s632_s2, 0 }
  0xd5   :  { %636 = shalt.err (%p815_p4)  }
  0xd6   :  { %638 = vsyncmov [#allocation3 + $0x7] }
  0xd9   :  { %s639_s3 = vpop.sfrf %638 }
  0xda   :  { %p816_p5 = scmp.ne.s32.totalorder %s639_s3, 0 }
  0xdc   :  { %643 = shalt.err (%p816_p5)  }

</bundles_post_ra>
